<compile_context>
chip_gen: v7x
topology: tpu7x:2x2x1
jax: 0.10.0
libtpu: 0.0.40
codegen_flags: <defaults>
</compile_context>

<pallas_src>
import functools
import math

import jax
import jax.numpy as jnp
from jax.experimental import pallas as pl
from jax.experimental.pallas import tpu as pltpu


def _round_up(n, m):
    return ((n + m - 1) // m) * m


# ----------------------------------------------------------------------------
# One-time parameter preparation (NOT per step).
# ----------------------------------------------------------------------------
def prepare_gru_params(wx, wh, bx, bh, compute_dtype=jnp.bfloat16):
    """wx: (3H, In), wh: (3H, H), bx/bh: (3H,)  ->  fused, lane-padded panels.

    Gate order is [r, z, n] (PyTorch chunk order).  The hidden dim is padded
    to a multiple of 128 so every gate block is lane-aligned, and the three
    gates are fused back along the lane axis so each matmul is a single wide
    (K, 3*Hp) MXU pass.

    Returns:
      wx_f     : (In, 3*Hp)  compute_dtype  fused + padded input weights
      wh_f     : (Hp, 3*Hp)  compute_dtype  fused + padded hidden weights
      bx_fused : (1, 3*Hp)   f32   [bx_r+bh_r | bx_z+bh_z | bx_n]
      bh_n     : (1, Hp)     f32   hidden n-gate bias (scaled by r in-kernel)
    """
    three_h, in_size = wx.shape
    H = three_h // 3
    Hp = _round_up(H, 128)

    wx_g = jnp.transpose(wx.reshape(3, H, in_size), (0, 2, 1))   # (3, In, H)
    wh_g = jnp.transpose(wh.reshape(3, H, H), (0, 2, 1))         # (3, H, H)
    wx_g = jnp.pad(wx_g, ((0, 0), (0, 0), (0, Hp - H)))          # (3, In, Hp)
    wh_g = jnp.pad(wh_g, ((0, 0), (0, Hp - H), (0, Hp - H)))     # (3, Hp, Hp)
    wx_f = jnp.concatenate([wx_g[0], wx_g[1], wx_g[2]], axis=1)  # (In, 3Hp)
    wh_f = jnp.concatenate([wh_g[0], wh_g[1], wh_g[2]], axis=1)  # (Hp, 3Hp)

    bx3 = bx.reshape(3, H).astype(jnp.float32)
    bh3 = bh.reshape(3, H).astype(jnp.float32)
    pad = lambda v: jnp.pad(v, (0, Hp - H))
    bx_fused = jnp.concatenate(
        [pad(bx3[0] + bh3[0]), pad(bx3[1] + bh3[1]), pad(bx3[2])]
    ).reshape(1, 3 * Hp)
    bh_n = pad(bh3[2]).reshape(1, Hp)

    return (wx_f.astype(compute_dtype), wh_f.astype(compute_dtype),
            bx_fused, bh_n)


# ----------------------------------------------------------------------------
# Single-step GRU cell (matches the PyTorch module's forward).
# ----------------------------------------------------------------------------
def gru_cell_kernel(x_ref, h_ref, wxf_ref, whf_ref, bxf_ref, bhn_ref, o_ref):
    Hp = bhn_ref.shape[-1]
    h = h_ref[...]                                               # (Bp, Hp) f32
    # bf16 MXU matmuls with f32 accumulation; elementwise math stays f32.
    gi = jnp.dot(x_ref[...], wxf_ref[...],
                 preferred_element_type=jnp.float32) + bxf_ref[...]
    gh = jnp.dot(h.astype(whf_ref.dtype), whf_ref[...],
                 preferred_element_type=jnp.float32)
    r = jax.nn.sigmoid(gi[:, :Hp] + gh[:, :Hp])
    z = jax.nn.sigmoid(gi[:, Hp:2 * Hp] + gh[:, Hp:2 * Hp])
    n = jnp.tanh(gi[:, 2 * Hp:] + r * (gh[:, 2 * Hp:] + bhn_ref[...]))
    o_ref[...] = (n + z * (h - n)).astype(o_ref.dtype)


@jax.jit
def gru_cell(x, hidden, wx_f, wh_f, bx_fused, bh_n):
    """Single GRU step (== module forward).  x: (B, In), hidden: (B, H)."""
    B = x.shape[0]
    H = hidden.shape[1]
    Hp = bh_n.shape[1]
    Bp = _round_up(B, 8)

    x_p = jnp.pad(x, ((0, Bp - B), (0, 0))).astype(wx_f.dtype)
    h_p = jnp.pad(hidden.astype(jnp.float32), ((0, Bp - B), (0, Hp - H)))

    out = pl.pallas_call(
        gru_cell_kernel,
        out_shape=jax.ShapeDtypeStruct((Bp, Hp), jnp.float32),
        in_specs=[pl.BlockSpec(memory_space=pltpu.VMEM)] * 6,
        out_specs=pl.BlockSpec(memory_space=pltpu.VMEM),
        compiler_params=pltpu.CompilerParams(
            vmem_limit_bytes=32 * 1024 * 1024),
    )(x_p, h_p, wx_f, wh_f, bx_fused, bh_n)
    return out[:B, :H].astype(hidden.dtype)


# ----------------------------------------------------------------------------
# Sequence variant: whole recurrence inside one pallas_call.
#   - input projection for ALL timesteps precomputed as one large bf16 matmul
#     (r/z/n input biases folded in), stored contiguous-per-timestep
#   - grid=(nb, T//T_BLK): "parallel" batch split (2 TCs on v7x), "arbitrary"
#     time axis; T_BLK steps per grid iteration via unrolled fori_loop
#   - Wh / bh_n resident in VMEM (constant index_map), hidden carried in a
#     VMEM f32 scratch accumulator.
# ----------------------------------------------------------------------------
def gru_seq_kernel(gx_ref, h0_ref, whf_ref, bhn_ref, o_ref, h_scratch):
    # Re-initialize the carried hidden state at the start of every batch block.
    @pl.when(pl.program_id(1) == 0)
    def _():
        h_scratch[...] = h0_ref[...].astype(jnp.float32)

    Hp = bhn_ref.shape[-1]
    t_blk = gx_ref.shape[0]
    wh = whf_ref[...]                 # (Hp, 3Hp) bf16, VMEM-resident
    bh_n = bhn_ref[...]               # (1, Hp) f32

    def step(t, h):
        gx = gx_ref[t].astype(jnp.float32)                     # (Bblk, 3Hp)
        gh = jnp.dot(h.astype(wh.dtype), wh,
                     preferred_element_type=jnp.float32)       # (Bblk, 3Hp)
        r = jax.nn.sigmoid(gx[:, :Hp] + gh[:, :Hp])
        z = jax.nn.sigmoid(gx[:, Hp:2 * Hp] + gh[:, Hp:2 * Hp])
        n = jnp.tanh(gx[:, 2 * Hp:] + r * (gh[:, 2 * Hp:] + bh_n))
        h_new = n + z * (h - n)
        o_ref[t] = h_new.astype(o_ref.dtype)
        return h_new

    h_scratch[...] = jax.lax.fori_loop(0, t_blk, step, h_scratch[...],
                                       unroll=True)


@functools.partial(jax.jit, static_argnames=("t_blk",))
def gru_sequence(x_seq, h0, wx_f, wh_f, bx_fused, bh_n, *, t_blk=8):
    """x_seq: (T, B, In), h0: (B, H)  ->  all hidden states (T, B, H)."""
    T, B, _ = x_seq.shape
    H = h0.shape[1]
    Hp = bh_n.shape[1]
    Bp = _round_up(B, 8)
    Tp = _round_up(T, t_blk)

    # One wide bf16 matmul for the whole-sequence input projection, with the
    # r/z/n input-side biases folded in.  Stored bf16 (halved DMA traffic),
    # contiguous per timestep -> one contiguous DMA per grid step.
    gx = jnp.einsum('tbi,ih->tbh', x_seq.astype(wx_f.dtype), wx_f,
                    preferred_element_type=jnp.float32) + bx_fused
    gx = gx.astype(jnp.bfloat16)
    gx = jnp.pad(gx, ((0, Tp - T), (0, Bp - B), (0, 0)))
    h0_p = jnp.pad(h0.astype(jnp.float32), ((0, Bp - B), (0, Hp - H)))

    # Optional 2-way batch split -> leading "parallel" grid axis (both TCs on
    # v7x).  The recurrence (time axis) is never split.
    nb = 2 if (Bp % 16 == 0) else 1
    b_blk = Bp // nb
    nt = Tp // t_blk

    out = pl.pallas_call(
        gru_seq_kernel,
        out_shape=jax.ShapeDtypeStruct((Tp, Bp, Hp), jnp.float32),
        grid=(nb, nt),
        in_specs=[
            pl.BlockSpec((t_blk, b_blk, 3 * Hp), lambda b, t: (t, b, 0)),
            pl.BlockSpec((b_blk, Hp), lambda b, t: (b, 0)),
            # Resident weight / bias blocks (constant index_map).  On v7x one
            # could add pipeline_mode=pl.Buffered(1) to halve their VMEM cost.
            pl.BlockSpec((Hp, 3 * Hp), lambda b, t: (0, 0)),
            pl.BlockSpec((1, Hp), lambda b, t: (0, 0)),
        ],
        out_specs=pl.BlockSpec((t_blk, b_blk, Hp), lambda b, t: (t, b, 0)),
        scratch_shapes=[pltpu.VMEM((b_blk, Hp), jnp.float32)],
        compiler_params=pltpu.CompilerParams(
            dimension_semantics=("parallel", "arbitrary"),
            vmem_limit_bytes=32 * 1024 * 1024),
    )(gx, h0_p, wh_f, bh_n)
    return out[:T, :B, :H].astype(h0.dtype)


# ----------------------------------------------------------------------------
# Pure-JAX reference matching the PyTorch forward exactly.
# ----------------------------------------------------------------------------
def gru_cell_ref(x, hidden, wx, wh, bx, bh):
    gx = x @ wx.T + bx
    gh = hidden @ wh.T + bh
    H = hidden.shape[1]
    i_r, i_z, i_n = gx[:, :H], gx[:, H:2 * H], gx[:, 2 * H:]
    h_r, h_z, h_n = gh[:, :H], gh[:, H:2 * H], gh[:, 2 * H:]
    r = jax.nn.sigmoid(i_r + h_r)
    z = jax.nn.sigmoid(i_z + h_z)
    n = jnp.tanh(i_n + h_n * r)
    return n + z * (hidden - n)


if __name__ == "__main__":
    input_size = 16
    hidden_size = 32
    batch = 8
    seq_len = 16

    key = jax.random.PRNGKey(0)
    k_x, k_xs, k_h, k_wx, k_wh, k_bx, k_bh = jax.random.split(key, 7)

    std = 1.0 / math.sqrt(hidden_size)
    wx = jax.random.uniform(k_wx, (3 * hidden_size, input_size),
                            jnp.float32, -std, std)
    wh = jax.random.uniform(k_wh, (3 * hidden_size, hidden_size),
                            jnp.float32, -std, std)
    bx = jax.random.uniform(k_bx, (3 * hidden_size,), jnp.float32, -std, std)
    bh = jax.random.uniform(k_bh, (3 * hidden_size,), jnp.float32, -std, std)

    x = jax.random.normal(k_x, (batch, input_size), jnp.float32)
    x_seq = jax.random.normal(k_xs, (seq_len, batch, input_size), jnp.float32)
    hidden = jax.random.normal(k_h, (batch, hidden_size), jnp.float32)

    # One-time parameter prep (hoisted out of the per-step path).
    params = prepare_gru_params(wx, wh, bx, bh)

    # --- single-step cell (module forward) ---
    out = gru_cell(x, hidden, *params)
    out = jax.block_until_ready(out)
    ref = gru_cell_ref(x, hidden, wx, wh, bx, bh)
    assert out.shape == (batch, hidden_size)
    assert jnp.allclose(out, ref, atol=2e-2, rtol=2e-2), "cell mismatch"

    # --- full sequence in one pallas_call (recurrence resident in VMEM) ---
    out_seq = gru_sequence(x_seq, hidden, *params, t_blk=8)
    out_seq = jax.block_until_ready(out_seq)
    h_ref = hidden
    for t in range(seq_len):
        h_ref = gru_cell_ref(x_seq[t], h_ref, wx, wh, bx, bh)
        assert jnp.allclose(out_seq[t], h_ref, atol=5e-2, rtol=5e-2), \
            f"sequence mismatch at step {t}"

    print("KERNEL_OK")
</pallas_src>

<mosaic_0001>
module attributes {stable_mosaic.version = 11 : i64} {
  func.func @gru_cell_kernel(%arg0: memref<8x16xbf16, #tpu.memory_space<vmem>>, %arg1: memref<8x128xf32, #tpu.memory_space<vmem>>, %arg2: memref<16x384xbf16, #tpu.memory_space<vmem>>, %arg3: memref<128x384xbf16, #tpu.memory_space<vmem>>, %arg4: memref<1x384xf32, #tpu.memory_space<vmem>>, %arg5: memref<1x128xf32, #tpu.memory_space<vmem>>, %arg6: memref<8x128xf32, #tpu.memory_space<vmem>>) attributes {dimension_semantics = [], scalar_prefetch = 0 : i64, scratch_operands = 0 : i64, tpu.core_type = #tpu.core_type<tc>} {
    %c0 = arith.constant 0 : index
    %c0_0 = arith.constant 0 : index
    %0 = vector.load %arg1[%c0, %c0_0] : memref<8x128xf32, #tpu.memory_space<vmem>>, vector<8x128xf32>
    %c0_1 = arith.constant 0 : index
    %c0_2 = arith.constant 0 : index
    %1 = vector.load %arg0[%c0_1, %c0_2] : memref<8x16xbf16, #tpu.memory_space<vmem>>, vector<8x16xbf16>
    %c0_3 = arith.constant 0 : index
    %c0_4 = arith.constant 0 : index
    %2 = vector.load %arg2[%c0_3, %c0_4] : memref<16x384xbf16, #tpu.memory_space<vmem>>, vector<16x384xbf16>
    %cst = arith.constant dense<0.000000e+00> : vector<8x384xf32>
    %3 = tpu.matmul %1, %2, %cst {dimension_numbers = #tpu.dot_dimension_numbers<[1], [0], [0], [1], [0, 0, 1, 1], [], []>} : vector<8x16xbf16>, vector<16x384xbf16>, vector<8x384xf32> -> vector<8x384xf32>
    %c0_5 = arith.constant 0 : index
    %c0_6 = arith.constant 0 : index
    %4 = vector.load %arg4[%c0_5, %c0_6] : memref<1x384xf32, #tpu.memory_space<vmem>>, vector<1x384xf32>
    %5 = vector.broadcast %4 : vector<1x384xf32> to vector<8x384xf32>
    %6 = arith.addf %3, %5 : vector<8x384xf32>
    %7 = arith.truncf %0 : vector<8x128xf32> to vector<8x128xbf16>
    %c0_7 = arith.constant 0 : index
    %c0_8 = arith.constant 0 : index
    %8 = vector.load %arg3[%c0_7, %c0_8] : memref<128x384xbf16, #tpu.memory_space<vmem>>, vector<128x384xbf16>
    %cst_9 = arith.constant dense<0.000000e+00> : vector<8x384xf32>
    %9 = tpu.matmul %7, %8, %cst_9 {dimension_numbers = #tpu.dot_dimension_numbers<[1], [0], [0], [1], [0, 0, 1, 1], [], []>} : vector<8x128xbf16>, vector<128x384xbf16>, vector<8x384xf32> -> vector<8x384xf32>
    %10 = vector.extract_strided_slice %6 {offsets = [0, 0], sizes = [8, 128], strides = [1, 1]} : vector<8x384xf32> to vector<8x128xf32>
    %11 = vector.extract_strided_slice %9 {offsets = [0, 0], sizes = [8, 128], strides = [1, 1]} : vector<8x384xf32> to vector<8x128xf32>
    %12 = arith.addf %10, %11 : vector<8x128xf32>
    %13 = arith.negf %12 : vector<8x128xf32>
    %14 = math.exp %13 : vector<8x128xf32>
    %cst_10 = arith.constant 1.000000e+00 : f32
    %15 = vector.broadcast %cst_10 : f32 to vector<8x128xf32>
    %16 = arith.addf %15, %14 : vector<8x128xf32>
    %17 = arith.divf %15, %16 : vector<8x128xf32>
    %18 = vector.extract_strided_slice %6 {offsets = [0, 128], sizes = [8, 128], strides = [1, 1]} : vector<8x384xf32> to vector<8x128xf32>
    %19 = vector.extract_strided_slice %9 {offsets = [0, 128], sizes = [8, 128], strides = [1, 1]} : vector<8x384xf32> to vector<8x128xf32>
    %20 = arith.addf %18, %19 : vector<8x128xf32>
    %21 = arith.negf %20 : vector<8x128xf32>
    %22 = math.exp %21 : vector<8x128xf32>
    %cst_11 = arith.constant 1.000000e+00 : f32
    %23 = vector.broadcast %cst_11 : f32 to vector<8x128xf32>
    %24 = arith.addf %23, %22 : vector<8x128xf32>
    %25 = arith.divf %23, %24 : vector<8x128xf32>
    %26 = vector.extract_strided_slice %6 {offsets = [0, 256], sizes = [8, 128], strides = [1, 1]} : vector<8x384xf32> to vector<8x128xf32>
    %27 = vector.extract_strided_slice %9 {offsets = [0, 256], sizes = [8, 128], strides = [1, 1]} : vector<8x384xf32> to vector<8x128xf32>
    %c0_12 = arith.constant 0 : index
    %c0_13 = arith.constant 0 : index
    %28 = vector.load %arg5[%c0_12, %c0_13] : memref<1x128xf32, #tpu.memory_space<vmem>>, vector<1x128xf32>
    %29 = vector.broadcast %28 : vector<1x128xf32> to vector<8x128xf32>
    %30 = arith.addf %27, %29 : vector<8x128xf32>
    %31 = arith.mulf %17, %30 : vector<8x128xf32>
    %32 = arith.addf %26, %31 : vector<8x128xf32>
    %33 = math.tanh %32 : vector<8x128xf32>
    %34 = arith.subf %0, %33 : vector<8x128xf32>
    %35 = arith.mulf %25, %34 : vector<8x128xf32>
    %36 = arith.addf %33, %35 : vector<8x128xf32>
    %c0_14 = arith.constant 0 : index
    %c0_15 = arith.constant 0 : index
    %37 = vector.load %arg6[%c0_14, %c0_15] : memref<8x128xf32, #tpu.memory_space<vmem>>, vector<8x128xf32>
    tpu.vector_store %arg6[%c0_14, %c0_15], %36 {strides = array<i32>} : memref<8x128xf32, #tpu.memory_space<vmem>>, vector<8x128xf32>,
    return
  }
}

</mosaic_0001>

<bundles_post_ra>
// kernel: gru_cell.1
= control target key start
LH: loop header
LB: loop body
LE: loop exit
PB: predicated region body
PF: predicated region fallthrough
CT: control target
= control target key end

     0   :  { %11 = vsyncpa [#allocation3], 0  ;;  %s727_s0 = inlined_call_operand.vmem [shape: bf16[8,16], index: 0, kind: input, shape index: {}]   ;;  %s728_s1 = inlined_call_operand.vmem [shape: f32[8,128], index: 1, kind: input, shape index: {}]   ;;  %s729_s2 = inlined_call_operand.vmem [shape: bf16[16,384], index: 2, kind: input, shape index: {}]   ;;  %s730_s3 = inlined_call_operand.hbm [shape: bf16[128,384], index: 3, kind: input, shape index: {}]   ;;  %s731_s4 = inlined_call_operand.vmem [shape: f32[1,384], index: 4, kind: input, shape index: {}]   ;;  %s732_s5 = inlined_call_operand.vmem [shape: f32[1,128], index: 5, kind: input, shape index: {}]   ;;  %s733_s6 = inlined_call_operand.hbm [shape: f32[8,128], index: 6, kind: output, shape index: {}]  }
   0x1   :  { %12 = vsyncpa [#allocation4], 0  ;;  %s625_s21 = smov [#allocation2]   ;;  %s577_s25 = scalar_lea.hbm %s730_s3, 3072 }
   0x2   :  { %s24_s22 = sshll.u32 %s625_s21, 4  ;;  %p578_p0 = scmp.ne.s32.totalorder %s730_s3, %s577_s25  ;;  %s25_s22 = int_to_ptr.vmem [resolvable:$true] %s24_s22 }
   0x3   :  { %p581_p1 = scmp.lt.u32.totalorder %s577_s25, %s730_s3 }
   0x5   :  { %p583_p2 = pnand %p581_p1, %p578_p0 }
   0x7   :  { %586 = shalt.err (!%p583_p2)
}
   0x8   :  { %s587_s30 = scalar_lea.vmem %s25_s22, 3072  ;;  %p592_p4 = scmp.lt.s32.totalorder %s25_s22, %s25_s22 }
   0x9   :  { %p588_p3 = scmp.ne.s32.totalorder %s25_s22, %s587_s30  ;;  %p593_p5 = scmp.lt.s32.totalorder %s587_s30, %s587_s30 }
   0xb   :  { %p594_p6 = por %p593_p5, %p592_p4 }
   0xd   :  { %p595_p7 = pnand %p594_p6, %p588_p3 }
   0xf   :  { %598 = shalt.err (!%p595_p7)
}
  0x10   :  { %s626_s7 = smov 192   ;;  %s627_s8 = smov 12  }
  0x11   :  { %30 = dma.hbm_to_vmem [thread:$0]  %s730_s3, 3072, %s25_s22, [#allocation3], %s626_s7, %s626_s7, %s627_s8  }
  0x12   :  { %621 = dma.done.wait [#allocation3], 3072  }
  0x13   :  { %622 = vsyncadd [#allocation3], 4294964224  ;;  %v628_v0 = vmov 0   ;;  %v629_v1 = vmov 0.0   ;;  %vm630_vm0 = vmmov 0   ;;  %vm78_vm1 = vcmask 130048  }
  0x14   :  { %114 = vmatprep.mubr.bf16.mxu0 %v628_v0  ;;  %492 = vmatprep.subr.bf16.mxu1 %v629_v1  ;;  %v531_v2 = vld [vmem:[%s729_s2 + $0x4] ss:$12 sps:$4 sm:$0xff]   ;;  %v533_v3 = vld [vmem:[%s729_s2] ss:$12 sps:$4 sm:$0xff]   ;;  %v539_v7 = vld [vmem:[#allocation2 + $0x1c] ss:$12 sps:$4 sm:$0xff]   ;;  %v47_v36 = vlaneseq }
  0x15   :  { %494 = vmatprep.mubr.msk.bf16.mxu1 %vm630_vm0, %v629_v1  ;;  %82 = vmatprep.subr.bf16.mxu0 %v531_v2  ;;  %v534_v4 = vld [vmem:[#allocation2] ss:$12 sps:$4 sm:$0xff]   ;;  %v536_v5 = vld [vmem:[#allocation2 + $0x4] ss:$12 sps:$4 sm:$0xff]   ;;  %v549_v10 = vld [vmem:[%s729_s2 + $0x8] ss:$12 sps:$4 sm:$0xff]  }
  0x16   :  { %83 = vmatpush1.bf16.msra.mxu0 %v533_v3  ;;  %v40_v6 = vld [vmem:[%s727_s0] sm:$0xf]  ;;  %v537_v8 = vld [vmem:[#allocation2 + $0x18] ss:$12 sps:$4 sm:$0xff]   ;;  %v540_v11 = vld [vmem:[#allocation2 + $0x30] ss:$12 sps:$4 sm:$0xff]   ;;  %493 = vmatpush3.bf16.msra.mxu1 %v549_v10 }
  0x17   :  { %324 = vmatprep.subr.bf16.mxu0 %v536_v5  ;;  %v542_v9 = vld [vmem:[#allocation2 + $0x34] ss:$12 sps:$4 sm:$0xff]   ;;  %v545_v12 = vld [vmem:[#allocation2 + $0x4c] ss:$12 sps:$4 sm:$0xff]   ;;  %498 = vmatprep.subr.bf16.mxu1 %v629_v1  ;;  %v548_v16 = vld [vmem:[#allocation2 + $0x64] ss:$12 sps:$4 sm:$0xff]  }
  0x18   :  { %v556_v13 = vld [vmem:[#allocation2 + $0x8] ss:$12 sps:$4 sm:$0xff]   ;;  %v560_v15 = vld [vmem:[#allocation2 + $0x20] ss:$12 sps:$4 sm:$0xff]   ;;  %v561_v18 = vld [vmem:[#allocation2 + $0x38] ss:$12 sps:$4 sm:$0xff]  }
  0x19   :  { %452 = vmatmul.mubr.msk.bf16.vlgmr.msra.gmra.mrb[0].mxu0 %vm78_vm1, %v40_v6  ;;  %495 = vmatmul.mubr.msk.bf16.vlgmr.msra.gmra.mrb[0].mxu1 %vm78_vm1, %v40_v6  ;;  %v543_v14 = vld [vmem:[#allocation2 + $0x48] ss:$12 sps:$4 sm:$0xff]   ;;  %v546_v17 = vld [vmem:[#allocation2 + $0x60] ss:$12 sps:$4 sm:$0xff]   ;;  %v550_v20 = vld [vmem:[#allocation2 + $0x78] ss:$12 sps:$4 sm:$0xff]  }
  0x1a   :  { %325 = vmatpush1.bf16.msra.mxu0 %v534_v4  ;;  %356 = vmatprep.mubr.bf16.mxu0 %v628_v0  ;;  %v552_v19 = vld [vmem:[#allocation2 + $0x7c] ss:$12 sps:$4 sm:$0xff]   ;;  %v555_v22 = vld [vmem:[#allocation2 + $0x94] ss:$12 sps:$4 sm:$0xff]   ;;  %v559_v25 = vld [vmem:[#allocation2 + $0xac] ss:$12 sps:$4 sm:$0xff]  }
  0x1b   :  { %326 = vmatprep.subr.bf16.mxu0 %v539_v7  ;;  %499 = vmatpush3.bf16.msra.mxu1 %v556_v13  ;;  %v562_v21 = vld [vmem:[#allocation2 + $0x50] ss:$12 sps:$4 sm:$0xff]   ;;  %v563_v24 = vld [vmem:[#allocation2 + $0x68] ss:$12 sps:$4 sm:$0xff]   ;;  %v39_v27 = vld [vmem:[%s728_s1] sm:$0xff]  ;;  %v48_v37 = vshrl.u32 %v47_v36, 7 }
  0x1c   :  { %500 = vmatprep.subr.bf16.mxu1 %v629_v1  ;;  %514 = vmatprep.mubr.msk.bf16.mxu1 %vm630_vm0, %v629_v1  ;;  %v553_v23 = vld [vmem:[#allocation2 + $0x90] ss:$12 sps:$4 sm:$0xff]   ;;  %v557_v26 = vld [vmem:[#allocation2 + $0xa8] ss:$12 sps:$4 sm:$0xff]   ;;  %v564_v28 = vld [vmem:[#allocation2 + $0x80] ss:$12 sps:$4 sm:$0xff]   ;;  %v163_v29 = vpack.c.bf16 %v39_v27, %v39_v27 }
  0x1d   :  { %v565_v30 = vld [vmem:[#allocation2 + $0x98] ss:$12 sps:$4 sm:$0xff]   ;;  %v566_v31 = vld [vmem:[#allocation2 + $0xb0] ss:$12 sps:$4 sm:$0xff]   ;;  %v49_v38 = vsub.s32 0, %v48_v37  ;;  %v53_v43 = vsub.s32 1, %v48_v37 }
  0x1e   :  { %327 = vmatpush1.bf16.msra.mxu0 %v537_v8  ;;  %v45_v39 = vld [vmem:[%s731_s4] sm:$0x7]  ;;  %v57_v57 = vsub.s32 2, %v48_v37  ;;  %s631_s20 = smov [#allocation5]  }
  0x1f   :  { %328 = vmatprep.subr.bf16.mxu0 %v542_v9  ;;  %501 = vmatpush3.bf16.msra.mxu1 %v560_v15  ;;  %v50_v40 = vrot.slane %v45_v39, %v49_v38  ;;  %v54_v48 = vrot.slane %v45_v39, %v53_v43  ;;  %v480_v58 = vld [vmem:[%s732_s5] ss:$0 sm:$0xff]  ;;  %s440_s21 = sshll.u32 %s631_s20, 4  ;;  %s441_s21 = int_to_ptr.vmem [resolvable:$true] %s440_s21 }
  0x20   :  { %502 = vmatprep.subr.bf16.mxu1 %v629_v1  ;;  %v58_v59 = vrot.slane %v45_v39, %v57_v57  ;;  %s599_s5 = scalar_lea.vmem %s441_s21, 128  ;;  %p604_p9 = scmp.lt.s32.totalorder %s441_s21, %s441_s21 }
  0x21   :  { %p600_p8 = scmp.ne.s32.totalorder %s441_s21, %s599_s5  ;;  %p605_p10 = scmp.lt.s32.totalorder %s599_s5, %s599_s5 }
  0x22   :  { %329 = vmatpush1.bf16.msra.mxu0 %v540_v11 }
  0x23   :  { %330 = vmatprep.subr.bf16.mxu0 %v545_v12  ;;  %503 = vmatpush3.bf16.msra.mxu1 %v561_v18  ;;  %p606_p11 = por %p605_p10, %p604_p9 }
  0x24   :  { %504 = vmatprep.subr.bf16.mxu1 %v629_v1 }
  0x25   :  { %p607_p12 = pnand %p606_p11, %p600_p8 }
  0x26   :  { %331 = vmatpush1.bf16.msra.mxu0 %v543_v14 }
  0x27   :  { %332 = vmatprep.subr.bf16.mxu0 %v548_v16  ;;  %505 = vmatpush3.bf16.msra.mxu1 %v562_v21 }
  0x28   :  { %506 = vmatprep.subr.bf16.mxu1 %v629_v1 }
  0x2a   :  { %333 = vmatpush1.bf16.msra.mxu0 %v546_v17 }
  0x2b   :  { %334 = vmatprep.subr.bf16.mxu0 %v552_v19  ;;  %507 = vmatpush3.bf16.msra.mxu1 %v563_v24 }
  0x2c   :  { %508 = vmatprep.subr.bf16.mxu1 %v629_v1 }
  0x2e   :  { %335 = vmatpush1.bf16.msra.mxu0 %v550_v20 }
  0x2f   :  { %336 = vmatprep.subr.bf16.mxu0 %v555_v22  ;;  %509 = vmatpush3.bf16.msra.mxu1 %v564_v28 }
  0x30   :  { %510 = vmatprep.subr.bf16.mxu1 %v629_v1 }
  0x32   :  { %337 = vmatpush1.bf16.msra.mxu0 %v553_v23 }
  0x33   :  { %338 = vmatprep.subr.bf16.mxu0 %v559_v25  ;;  %511 = vmatpush3.bf16.msra.mxu1 %v565_v30 }
  0x34   :  { %512 = vmatprep.subr.bf16.mxu1 %v629_v1 }
  0x36   :  { %339 = vmatpush1.bf16.msra.mxu0 %v557_v26 }
  0x37   :  { %513 = vmatpush3.bf16.msra.mxu1 %v566_v31 }
  0x39   :  { %357 = vmatmul.mubr.bf16.vlgmr.msra.gmra.mrb[0].mxu0 %v163_v29 }
  0x3a   :  { %515 = vmatmul.mubr.bf16.vlgmr.msra.gmra.mrb[4].mxu1 %v163_v29 }
  0xec   :  { %v157_v32 = vpop.f32.mrb[0].mxu1 }
  0xed   :  { %v496_v33 = vpop.f32.mrb[1].mxu1  ;;  %v158_v63 = vadd.f32 %v157_v32, %v58_v59 }
  0xee   :  { %v160_v34 = vpop.f32.mrb[2].mxu1 }
  0xef   :  { %v497_v35 = vpop.f32.mrb[3].mxu1 }
 0x10c   :  { %v358_v41 = vpop.f32.mrb[0].mxu0 }
 0x10d   :  { %v518_v42 = vadd.f32 %v358_v41, %v50_v40  ;;  %v360_v44 = vpop.f32.mrb[1].mxu0  ;;  %v399_v49 = vpop.f32.mrb[4].mxu1 }
 0x10e   :  { %v362_v45 = vpop.f32.mrb[2].mxu0  ;;  %v519_v50 = vadd.f32 %v360_v44, %v54_v48  ;;  %v516_v51 = vpop.f32.mrb[5].mxu1  ;;  %v426_v60 = vadd.f32 %v480_v58, %v399_v49 }
 0x10f   :  { %v478_v46 = vmul.f32 -1.442695, %v518_v42  ;;  %v363_v47 = vpop.f32.mrb[3].mxu0  ;;  %v402_v52 = vpop.f32.mrb[6].mxu1 }
 0x110   :  { %v517_v53 = vpop.f32.mrb[7].mxu1  ;;  %v479_v54 = vmul.f32 -1.442695, %v519_v50 }
 0x111   :  { %567 = vpow2.f32 %v478_v46 }
 0x112   :  { %569 = vpow2.f32 %v479_v54 }
 0x11b   :  { %v568_v55 = vpop.eup %567 }
 0x11c   :  { %v409_v56 = vadd.f32 1.0, %v568_v55  ;;  %v570_v61 = vpop.eup %569 }
 0x11d   :  { %v416_v1 = vadd.f32 1.0, %v570_v61 }
 0x11e   :  { %571 = vrcp.f32 %v409_v56 }
 0x128   :  { %v572_v62 = vpop.eup %571 }
 0x129   :  { %v427_v0 = vmul.f32 %v572_v62, %v426_v60 }
 0x12b   :  { %v428_v2 = vadd.f32 %v427_v0, %v158_v63 }
 0x12d   :  { %573 = vtanh.f32 %v428_v2 }
 0x12e   :  { %575 = vrcp.f32 %v416_v1 }
 0x137   :  { %v574_v3 = vpop.eup %573 }
 0x138   :  { %v430_v4 = vsub.f32 %v39_v27, %v574_v3  ;;  %v576_v5 = vpop.eup %575 }
 0x13a   :  { %v431_v6 = vmul.f32 %v576_v5, %v430_v4 }
 0x13c   :  { %v432_v7 = vadd.f32 %v574_v3, %v431_v6 }
 0x13e   :  { %433 = vst [vmem:[#allocation5] sm:$0xff] %v432_v7 }
 0x13f   :  { %610 = shalt.err (!%p607_p12)
}
 0x140   :  { %s611_s24 = scalar_lea.hbm %s733_s6, 128 }
 0x141   :  { %p612_p13 = scmp.ne.s32.totalorder %s733_s6, %s611_s24  ;;  %p615_p0 = scmp.lt.u32.totalorder %s611_s24, %s733_s6 }
 0x143   :  { %p617_p1 = pnand %p615_p0, %p612_p13 }
 0x145   :  { %620 = shalt.err (!%p617_p1)
}
 0x146   :  { %443 = dma.vmem_to_hbm [thread:$0]  %s441_s21, 128, %s733_s6, [#allocation4]  }
 0x147   :  { %623 = dma.done.wait [#allocation4], 128  }
 0x148   :  { %624 = vsyncadd [#allocation4], 4294967168 }
 0x149   :  { %447 = vsyncpa [#allocation3], 1 }
 0x14a   :  { %448 = vsyncpa [#allocation4], 1 }

</bundles_post_ra>
